<compile_context>
chip_gen: v6e
topology: v6e:2x2x1
jax: 0.10.0
libtpu: 0.0.40
codegen_flags: <defaults>
</compile_context>

<pallas_src>
import jax
import jax.numpy as jnp
from jax.experimental import pallas as pl
from jax.experimental.pallas import tpu as pltpu


# --------------------------------------------------------------------------
# Fused kernel factory (B, L, channel sizes static -> single kernel body)
# --------------------------------------------------------------------------
def make_forward(B, L, Cin, num_filters=64, n_steps=10):
    D1, D2 = num_filters, 2 * num_filters
    assert L % 4 == 0, "two MaxPool1d(2) stages need L divisible by 4"
    L1, L2 = L // 2, L // 4            # lengths after pool 1 / pool 2 (16 -> 8 -> 4)
    N1, N2, N3 = B * L, B * L1, B * L2

    def conv_block(x, seq_len, w_ref, bias, pool_ref):
        """Conv1d(k=3, p=1) with folded eval-BN -> ReLU -> MaxPool1d(2).

        x: (N, C) rows, batch-major / length-minor. Returns (N // 2, Cout)."""
        N = x.shape[0]
        iota = jax.lax.broadcasted_iota(jnp.int32, (N, 1), 0)
        if seq_len & (seq_len - 1) == 0:          # power-of-two: cheap mask
            pos = iota & (seq_len - 1)
        else:
            pos = iota % seq_len
        # Length-shifted operands; zeros at each batch boundary == Conv1d padding=1.
        x_prev = jnp.where(pos == 0, 0.0, pltpu.roll(x, shift=1, axis=0))
        x_next = jnp.where(pos == seq_len - 1, 0.0, pltpu.roll(x, shift=N - 1, axis=0))
        # One MXU matmul for all three taps: [x_{l-1} | x_l | x_{l+1}] @ (3C, Cout).
        xcat = jnp.concatenate([x_prev, x, x_next], axis=-1)
        y = jnp.dot(xcat, w_ref[...], preferred_element_type=jnp.float32) + bias
        y = jnp.maximum(y, 0.0)                                   # ReLU
        # MaxPool1d(2): adjacent-row max; valid results sit on even rows. The wrap-around
        # row (index N-1, odd because seq_len is even) is never selected by the stride-2
        # read below, so no cross-batch contamination.
        pool_ref[...] = jnp.maximum(y, pltpu.roll(y, shift=N - 1, axis=0))
        # Dropout: identity (eval).
        return pool_ref[pl.ds(0, N // 2, stride=2), :]

    def kernel(x_ref, w1_ref, w2_ref, wfc_ref, b_ref, out_ref, s1_ref, s2_ref, s3_ref):
        h1 = conv_block(x_ref[...], L, w1_ref, b_ref[0:1, 0:D1], s1_ref)     # (N2, D1)
        h2 = conv_block(h1, L1, w2_ref, b_ref[1:2, 0:D2], s2_ref)            # (N3, D2)

        # mean over the remaining L2 positions of each batch: accumulate the L2
        # consecutive rows with sublane rolls, then pick row b*L2 of every batch.
        acc = h2
        for d in range(1, L2):
            acc = acc + pltpu.roll(h2, shift=N3 - d, axis=0)
        s3_ref[...] = acc
        feat = s3_ref[pl.ds(0, B, stride=L2), :] * (1.0 / L2)                # (B, D2)

        out_ref[...] = (jnp.dot(feat, wfc_ref[...], preferred_element_type=jnp.float32)
                        + b_ref[2:3, 0:n_steps])

    vmem = pl.BlockSpec(memory_space=pltpu.MemorySpace.VMEM)

    @jax.jit
    def forward(prep, x):
        # x: (B, L, Cin); row-major collapse of (B, L) is a free metadata reshape.
        x2d = x.reshape(N1, Cin)
        return pl.pallas_call(
            kernel,
            out_shape=jax.ShapeDtypeStruct((B, n_steps), jnp.float32),
            in_specs=[vmem] * 5,
            out_specs=vmem,
            scratch_shapes=[
                pltpu.VMEM((N1, D1), jnp.float32),   # layer-1 pair-max
                pltpu.VMEM((N2, D2), jnp.float32),   # layer-2 pair-max
                pltpu.VMEM((N3, D2), jnp.float32),   # per-batch row sums
            ],
        )(x2d, prep['w1'], prep['w2'], prep['wfc'], prep['bslab'])

    return forward


# --------------------------------------------------------------------------
# Parameter init (PyTorch layouts, incl. BN running stats) and one-time prep
# --------------------------------------------------------------------------
def init_params(key, cin, num_filters=64, kernel_size=3, n_steps=10):
    D1, D2, K = num_filters, 2 * num_filters, kernel_size
    ks = jax.random.split(key, 6)
    rnd = lambda k, shape: jax.random.normal(k, shape, jnp.float32) * 0.1
    return {
        'conv1_w': rnd(ks[0], (D1, cin, K)), 'conv1_b': rnd(ks[1], (D1,)),
        'bn1_gamma': jnp.ones((D1,), jnp.float32), 'bn1_beta': jnp.zeros((D1,), jnp.float32),
        'bn1_rmean': jnp.zeros((D1,), jnp.float32), 'bn1_rvar': jnp.ones((D1,), jnp.float32),
        'conv2_w': rnd(ks[2], (D2, D1, K)), 'conv2_b': rnd(ks[3], (D2,)),
        'bn2_gamma': jnp.ones((D2,), jnp.float32), 'bn2_beta': jnp.zeros((D2,), jnp.float32),
        'bn2_rmean': jnp.zeros((D2,), jnp.float32), 'bn2_rvar': jnp.ones((D2,), jnp.float32),
        'fc_w': rnd(ks[4], (n_steps, D2)), 'fc_b': rnd(ks[5], (n_steps,)),
    }


def prepare_params(params, eps=1e-5):
    """One-time re-layout + eval-mode BN folding (outside the per-call forward path)."""
    assert params['conv1_w'].shape[-1] == 3, "kernel assumes kernel_size=3, padding=1"
    D1 = params['conv1_w'].shape[0]
    D2 = params['conv2_w'].shape[0]
    n_steps = params['fc_w'].shape[0]

    def fold(conv_w, conv_b, gamma, beta, rmean, rvar):
        # (Cout, Cin, K) -> (K*Cin, Cout) tap-major (matches [prev | cur | next] concat),
        # with eval-mode BatchNorm folded in:  BN(conv(x)) == x @ (w*s) + ((b-rm)*s + beta).
        scale = gamma / jnp.sqrt(rvar + eps)                                   # (Cout,)
        w = jnp.transpose(conv_w, (2, 1, 0)).reshape(-1, conv_w.shape[0])      # (K*Cin, Cout)
        return w * scale[None, :], (conv_b - rmean) * scale + beta

    w1, b1 = fold(params['conv1_w'], params['conv1_b'], params['bn1_gamma'],
                  params['bn1_beta'], params['bn1_rmean'], params['bn1_rvar'])
    w2, b2 = fold(params['conv2_w'], params['conv2_b'], params['bn2_gamma'],
                  params['bn2_beta'], params['bn2_rmean'], params['bn2_rvar'])

    # Pack the three small bias vectors into one (3, W) slab -> one DMA instead of three.
    W = max(D1, D2, n_steps)
    bslab = jnp.zeros((3, W), jnp.float32)
    bslab = bslab.at[0, :D1].set(b1).at[1, :D2].set(b2).at[2, :n_steps].set(params['fc_b'])

    return {'w1': w1, 'w2': w2, 'wfc': params['fc_w'].T, 'bslab': bslab}


# --------------------------------------------------------------------------
# Pure-JAX eval-mode reference (for the in-script correctness check)
# --------------------------------------------------------------------------
def reference_forward(params, x, eps=1e-5):
    def conv1d(h, w, b):                      # h: (B, L, Cin), w: (Cout, Cin, 3), pad=1
        Lh = h.shape[1]
        hp = jnp.pad(h, ((0, 0), (1, 1), (0, 0)))
        return sum(jnp.einsum('blc,oc->blo', hp[:, k:k + Lh, :], w[:, :, k])
                   for k in range(w.shape[-1])) + b

    def bn(h, g, bta, rm, rv):
        return (h - rm) / jnp.sqrt(rv + eps) * g + bta

    def pool2(h):                             # MaxPool1d(2) over the length axis
        Bh, Lh, Ch = h.shape
        return jnp.max(h.reshape(Bh, Lh // 2, 2, Ch), axis=2)

    h = conv1d(x, params['conv1_w'], params['conv1_b'])
    h = pool2(jnp.maximum(bn(h, params['bn1_gamma'], params['bn1_beta'],
                             params['bn1_rmean'], params['bn1_rvar']), 0.0))
    h = conv1d(h, params['conv2_w'], params['conv2_b'])
    h = pool2(jnp.maximum(bn(h, params['bn2_gamma'], params['bn2_beta'],
                             params['bn2_rmean'], params['bn2_rvar']), 0.0))
    feat = h.mean(axis=1)
    return feat @ params['fc_w'].T + params['fc_b']


if __name__ == "__main__":
    B, L, CIN, NSTEPS = 2, 16, 4, 10          # input_shape = (16, 4), batch = 2
    key = jax.random.PRNGKey(0)
    kx, kp = jax.random.split(key)
    x = jax.random.normal(kx, (B, L, CIN), jnp.float32)

    params = init_params(kp, CIN, num_filters=64, kernel_size=3, n_steps=NSTEPS)
    prep = prepare_params(params)                       # one-time layout / BN-fold prep
    forward = make_forward(B, L, CIN, num_filters=64, n_steps=NSTEPS)

    out = forward(prep, x)
    jax.block_until_ready(out)
    assert out.shape == (B, NSTEPS) and out.dtype == jnp.float32

    # Correctness vs. pure-JAX eval-mode reference (loose tolerance for MXU rounding).
    ref = reference_forward(params, x)
    assert bool(jnp.allclose(out, ref, rtol=2e-2, atol=2e-2))

    print("KERNEL_OK")
</pallas_src>

<mosaic_0001>
module attributes {stable_mosaic.version = 11 : i64} {
  func.func @kernel(%arg0: memref<32x4xf32, #tpu.memory_space<vmem>>, %arg1: memref<12x64xf32, #tpu.memory_space<vmem>>, %arg2: memref<192x128xf32, #tpu.memory_space<vmem>>, %arg3: memref<128x10xf32, #tpu.memory_space<vmem>>, %arg4: memref<3x128xf32, #tpu.memory_space<vmem>>, %arg5: memref<2x10xf32, #tpu.memory_space<vmem>>, %arg6: memref<32x64xf32, #tpu.memory_space<vmem>>, %arg7: memref<16x128xf32, #tpu.memory_space<vmem>>, %arg8: memref<8x128xf32, #tpu.memory_space<vmem>>) attributes {dimension_semantics = [], scalar_prefetch = 0 : i64, scratch_operands = 3 : i64, tpu.core_type = #tpu.core_type<tc>} {
    %c0 = arith.constant 0 : index
    %c0_0 = arith.constant 0 : index
    %0 = vector.load %arg0[%c0, %c0_0] : memref<32x4xf32, #tpu.memory_space<vmem>>, vector<32x4xf32>
    %c0_1 = arith.constant 0 : index
    %c0_2 = arith.constant 0 : index
    %1 = vector.load %arg4[%c0_1, %c0_2] : memref<3x128xf32, #tpu.memory_space<vmem>>, vector<1x64xf32>
    %2 = tpu.iota {dimensions = array<i32: 0>} : vector<32x1xi32>
    %c15_i32 = arith.constant 15 : i32
    %3 = vector.broadcast %c15_i32 : i32 to vector<32x1xi32>
    %4 = arith.andi %2, %3 : vector<32x1xi32>
    %c0_i32 = arith.constant 0 : i32
    %5 = vector.broadcast %c0_i32 : i32 to vector<32x1xi32>
    %6 = arith.cmpi eq, %4, %5 : vector<32x1xi32>
    %c1_i32 = arith.constant 1 : i32
    %7 = tpu.dynamic_rotate %0 by %c1_i32 dim 0 : vector<32x4xf32>, i32 -> vector<32x4xf32>
    %cst = arith.constant 0.000000e+00 : f32
    %8 = vector.shape_cast %6 : vector<32x1xi1> to vector<32x1xi1>
    %9 = vector.broadcast %8 : vector<32x1xi1> to vector<32x4xi1>
    %10 = vector.broadcast %cst : f32 to vector<32x4xf32>
    %11 = arith.select %9, %10, %7 : vector<32x4xi1>, vector<32x4xf32>
    %c15_i32_3 = arith.constant 15 : i32
    %12 = vector.broadcast %c15_i32_3 : i32 to vector<32x1xi32>
    %13 = arith.cmpi eq, %4, %12 : vector<32x1xi32>
    %c31_i32 = arith.constant 31 : i32
    %14 = tpu.dynamic_rotate %0 by %c31_i32 dim 0 : vector<32x4xf32>, i32 -> vector<32x4xf32>
    %cst_4 = arith.constant 0.000000e+00 : f32
    %15 = vector.shape_cast %13 : vector<32x1xi1> to vector<32x1xi1>
    %16 = vector.broadcast %15 : vector<32x1xi1> to vector<32x4xi1>
    %17 = vector.broadcast %cst_4 : f32 to vector<32x4xf32>
    %18 = arith.select %16, %17, %14 : vector<32x4xi1>, vector<32x4xf32>
    %19 = tpu.concatenate %11, %0, %18 in 1 : vector<32x4xf32>, vector<32x4xf32>, vector<32x4xf32> -> vector<32x12xf32>
    %c0_5 = arith.constant 0 : index
    %c0_6 = arith.constant 0 : index
    %20 = vector.load %arg1[%c0_5, %c0_6] : memref<12x64xf32, #tpu.memory_space<vmem>>, vector<12x64xf32>
    %cst_7 = arith.constant dense<0.000000e+00> : vector<32x64xf32>
    %21 = tpu.matmul %19, %20, %cst_7 {dimension_numbers = #tpu.dot_dimension_numbers<[1], [0], [0], [1], [0, 0, 1, 1], [], []>} : vector<32x12xf32>, vector<12x64xf32>, vector<32x64xf32> -> vector<32x64xf32>
    %22 = vector.broadcast %1 : vector<1x64xf32> to vector<32x64xf32>
    %23 = arith.addf %21, %22 : vector<32x64xf32>
    %cst_8 = arith.constant 0.000000e+00 : f32
    %24 = vector.broadcast %cst_8 : f32 to vector<32x64xf32>
    %25 = arith.maximumf %23, %24 : vector<32x64xf32>
    %c31_i32_9 = arith.constant 31 : i32
    %26 = tpu.dynamic_rotate %25 by %c31_i32_9 dim 0 : vector<32x64xf32>, i32 -> vector<32x64xf32>
    %27 = arith.maximumf %25, %26 : vector<32x64xf32>
    %c0_10 = arith.constant 0 : index
    %c0_11 = arith.constant 0 : index
    %28 = vector.load %arg6[%c0_10, %c0_11] : memref<32x64xf32, #tpu.memory_space<vmem>>, vector<32x64xf32>
    tpu.vector_store %arg6[%c0_10, %c0_11], %27 {strides = array<i32>} : memref<32x64xf32, #tpu.memory_space<vmem>>, vector<32x64xf32>,
    %c0_12 = arith.constant 0 : index
    %c0_13 = arith.constant 0 : index
    %29 = tpu.strided_load %arg6[%c0_12, %c0_13] {strides = array<i32: 2, 1>} : memref<32x64xf32, #tpu.memory_space<vmem>>, vector<16x64xf32>
    %c1 = arith.constant 1 : index
    %c0_14 = arith.constant 0 : index
    %30 = vector.load %arg4[%c1, %c0_14] : memref<3x128xf32, #tpu.memory_space<vmem>>, vector<1x128xf32>
    %31 = tpu.iota {dimensions = array<i32: 0>} : vector<16x1xi32>
    %c7_i32 = arith.constant 7 : i32
    %32 = vector.broadcast %c7_i32 : i32 to vector<16x1xi32>
    %33 = arith.andi %31, %32 : vector<16x1xi32>
    %c0_i32_15 = arith.constant 0 : i32
    %34 = vector.broadcast %c0_i32_15 : i32 to vector<16x1xi32>
    %35 = arith.cmpi eq, %33, %34 : vector<16x1xi32>
    %c1_i32_16 = arith.constant 1 : i32
    %36 = tpu.dynamic_rotate %29 by %c1_i32_16 dim 0 : vector<16x64xf32>, i32 -> vector<16x64xf32>
    %cst_17 = arith.constant 0.000000e+00 : f32
    %37 = vector.shape_cast %35 : vector<16x1xi1> to vector<16x1xi1>
    %38 = vector.broadcast %37 : vector<16x1xi1> to vector<16x64xi1>
    %39 = vector.broadcast %cst_17 : f32 to vector<16x64xf32>
    %40 = arith.select %38, %39, %36 : vector<16x64xi1>, vector<16x64xf32>
    %c7_i32_18 = arith.constant 7 : i32
    %41 = vector.broadcast %c7_i32_18 : i32 to vector<16x1xi32>
    %42 = arith.cmpi eq, %33, %41 : vector<16x1xi32>
    %c15_i32_19 = arith.constant 15 : i32
    %43 = tpu.dynamic_rotate %29 by %c15_i32_19 dim 0 : vector<16x64xf32>, i32 -> vector<16x64xf32>
    %cst_20 = arith.constant 0.000000e+00 : f32
    %44 = vector.shape_cast %42 : vector<16x1xi1> to vector<16x1xi1>
    %45 = vector.broadcast %44 : vector<16x1xi1> to vector<16x64xi1>
    %46 = vector.broadcast %cst_20 : f32 to vector<16x64xf32>
    %47 = arith.select %45, %46, %43 : vector<16x64xi1>, vector<16x64xf32>
    %48 = tpu.concatenate %40, %29, %47 in 1 : vector<16x64xf32>, vector<16x64xf32>, vector<16x64xf32> -> vector<16x192xf32>
    %c0_21 = arith.constant 0 : index
    %c0_22 = arith.constant 0 : index
    %49 = vector.load %arg2[%c0_21, %c0_22] : memref<192x128xf32, #tpu.memory_space<vmem>>, vector<192x128xf32>
    %cst_23 = arith.constant dense<0.000000e+00> : vector<16x128xf32>
    %50 = tpu.matmul %48, %49, %cst_23 {dimension_numbers = #tpu.dot_dimension_numbers<[1], [0], [0], [1], [0, 0, 1, 1], [], []>} : vector<16x192xf32>, vector<192x128xf32>, vector<16x128xf32> -> vector<16x128xf32>
    %51 = vector.broadcast %30 : vector<1x128xf32> to vector<16x128xf32>
    %52 = arith.addf %50, %51 : vector<16x128xf32>
    %cst_24 = arith.constant 0.000000e+00 : f32
    %53 = vector.broadcast %cst_24 : f32 to vector<16x128xf32>
    %54 = arith.maximumf %52, %53 : vector<16x128xf32>
    %c15_i32_25 = arith.constant 15 : i32
    %55 = tpu.dynamic_rotate %54 by %c15_i32_25 dim 0 : vector<16x128xf32>, i32 -> vector<16x128xf32>
    %56 = arith.maximumf %54, %55 : vector<16x128xf32>
    %c0_26 = arith.constant 0 : index
    %c0_27 = arith.constant 0 : index
    %57 = vector.load %arg7[%c0_26, %c0_27] : memref<16x128xf32, #tpu.memory_space<vmem>>, vector<16x128xf32>
    tpu.vector_store %arg7[%c0_26, %c0_27], %56 {strides = array<i32>} : memref<16x128xf32, #tpu.memory_space<vmem>>, vector<16x128xf32>,
    %c0_28 = arith.constant 0 : index
    %c0_29 = arith.constant 0 : index
    %58 = tpu.strided_load %arg7[%c0_28, %c0_29] {strides = array<i32: 2, 1>} : memref<16x128xf32, #tpu.memory_space<vmem>>, vector<8x128xf32>
    %c7_i32_30 = arith.constant 7 : i32
    %59 = tpu.dynamic_rotate %58 by %c7_i32_30 dim 0 : vector<8x128xf32>, i32 -> vector<8x128xf32>
    %60 = arith.addf %58, %59 : vector<8x128xf32>
    %c6_i32 = arith.constant 6 : i32
    %61 = tpu.dynamic_rotate %58 by %c6_i32 dim 0 : vector<8x128xf32>, i32 -> vector<8x128xf32>
    %62 = arith.addf %60, %61 : vector<8x128xf32>
    %c5_i32 = arith.constant 5 : i32
    %63 = tpu.dynamic_rotate %58 by %c5_i32 dim 0 : vector<8x128xf32>, i32 -> vector<8x128xf32>
    %64 = arith.addf %62, %63 : vector<8x128xf32>
    %c0_31 = arith.constant 0 : index
    %c0_32 = arith.constant 0 : index
    %65 = vector.load %arg8[%c0_31, %c0_32] : memref<8x128xf32, #tpu.memory_space<vmem>>, vector<8x128xf32>
    tpu.vector_store %arg8[%c0_31, %c0_32], %64 {strides = array<i32>} : memref<8x128xf32, #tpu.memory_space<vmem>>, vector<8x128xf32>,
    %c0_33 = arith.constant 0 : index
    %c0_34 = arith.constant 0 : index
    %66 = tpu.strided_load %arg8[%c0_33, %c0_34] {strides = array<i32: 4, 1>} : memref<8x128xf32, #tpu.memory_space<vmem>>, vector<2x128xf32>
    %cst_35 = arith.constant 2.500000e-01 : f32
    %67 = vector.broadcast %cst_35 : f32 to vector<2x128xf32>
    %68 = arith.mulf %66, %67 : vector<2x128xf32>
    %c0_36 = arith.constant 0 : index
    %c0_37 = arith.constant 0 : index
    %69 = vector.load %arg3[%c0_36, %c0_37] : memref<128x10xf32, #tpu.memory_space<vmem>>, vector<128x10xf32>
    %cst_38 = arith.constant dense<0.000000e+00> : vector<2x10xf32>
    %70 = tpu.matmul %68, %69, %cst_38 {dimension_numbers = #tpu.dot_dimension_numbers<[1], [0], [0], [1], [0, 0, 1, 1], [], []>} : vector<2x128xf32>, vector<128x10xf32>, vector<2x10xf32> -> vector<2x10xf32>
    %c2 = arith.constant 2 : index
    %c0_39 = arith.constant 0 : index
    %71 = vector.load %arg4[%c2, %c0_39] : memref<3x128xf32, #tpu.memory_space<vmem>>, vector<1x10xf32>
    %72 = vector.broadcast %71 : vector<1x10xf32> to vector<2x10xf32>
    %73 = arith.addf %70, %72 : vector<2x10xf32>
    %c0_40 = arith.constant 0 : index
    %c0_41 = arith.constant 0 : index
    %74 = vector.load %arg5[%c0_40, %c0_41] : memref<2x10xf32, #tpu.memory_space<vmem>>, vector<2x10xf32>
    tpu.vector_store %arg5[%c0_40, %c0_41], %73 {strides = array<i32>} : memref<2x10xf32, #tpu.memory_space<vmem>>, vector<2x10xf32>,
    return
  }
}

</mosaic_0001>

<bundles_post_ra>
// kernel: forward.1
= control target key start
LH: loop header
LB: loop body
LE: loop exit
PB: predicated region body
PF: predicated region fallthrough
CT: control target
= control target key end

     0   :  { %10 = vsyncpa [#allocation6], 0  ;;  %s947_s0 = inlined_call_operand.vmem [shape: f32[32,4], index: 0, kind: input, shape index: {}]   ;;  %s948_s1 = inlined_call_operand.vmem [shape: f32[12,64], index: 1, kind: input, shape index: {}]   ;;  %s949_s2 = inlined_call_operand.hbm [shape: f32[192,128], index: 2, kind: input, shape index: {}]   ;;  %s950_s3 = inlined_call_operand.vmem [shape: f32[128,10], index: 3, kind: input, shape index: {}]   ;;  %s951_s4 = inlined_call_operand.vmem [shape: f32[3,128], index: 4, kind: input, shape index: {}]   ;;  %s952_s5 = inlined_call_operand.hbm [shape: f32[2,10], index: 5, kind: output, shape index: {}]  }
   0x1   :  { %11 = vsyncpa [#allocation7], 0  ;;  %s677_s18 = smov [#allocation5]  }
   0x2   :  { %s21_s19 = sshll.u32 %s677_s18, 4  ;;  %s22_s19 = int_to_ptr.vmem [resolvable:$true] %s21_s19 }
   0x3   :  { %s641_s20 = scalar_lea.vmem %s22_s19, 3072  ;;  %p646_p1 = scmp.lt.s32.totalorder %s22_s19, %s22_s19 }
   0x4   :  { %p642_p0 = scmp.ne.s32.totalorder %s22_s19, %s641_s20  ;;  %p647_p2 = scmp.lt.s32.totalorder %s641_s20, %s641_s20 }
   0x6   :  { %p648_p3 = por %p647_p2, %p646_p1 }
   0x8   :  { %p649_p4 = pnand %p648_p3, %p642_p0 }
   0xa   :  { %652 = shalt.err (!%p649_p4)
}
   0xb   :  { %s678_s21 = smov 128   ;;  %s679_s22 = smov 8  }
   0xc   :  { %27 = dma.hbm_to_vmem [thread:$0]  %s949_s2, 3072, %s22_s19, [#allocation6], %s678_s21, %s678_s21, %s679_s22  }
   0xd   :  { %673 = dma.done.wait [#allocation6], 3072  }
   0xe   :  { %674 = vsyncadd [#allocation6], 4294964224  ;;  %v40_v0 = vlaneseq  ;;  %v38_v5 = vld [vmem:[%s947_s0 + $0x18] sm:$0xff]  ;;  %v35_v6 = vld [vmem:[%s947_s0] sm:$0xff]  ;;  %vm160_vm1 = vcmask 1043456   ;;  %s680_s30 = smov 4  }
   0xf   :  { %v36_v7 = vld [vmem:[%s947_s0 + $0x8] sm:$0xff]  ;;  %109 = vrot.lane.b32.xlu1 %v38_v5, %s680_s30  ;;  %v56_v8 = vrot.slane %v38_v5, 7  ;;  %103 = vrot.lane.b32.xlu0 %v35_v6, %s680_s30  ;;  %v53_v9 = vrot.slane %v35_v6, 7  ;;  %v78_v10 = vrot.slane %v35_v6, 1  ;;  %v37_v11 = vld [vmem:[%s947_s0 + $0x10] sm:$0xff]  ;;  %v81_v17 = vrot.slane %v38_v5, 1 }
  0x10   :  { %v719_v1 = vshrl.u32 %v40_v0, 7  ;;  %v54_v12 = vrot.slane %v36_v7, 7  ;;  %v79_v13 = vrot.slane %v36_v7, 1  ;;  %v55_v14 = vrot.slane %v37_v11, 7  ;;  %v142_v16 = vld [vmem:[%s948_s1 + $0x8] sm:$0xf] }
  0x11   :  { %v80_v15 = vrot.slane %v37_v11, 1  ;;  %580 = vmatprep.subr.msk.mxu0 %vm160_vm1, %v142_v16  ;;  %v141_v21 = vld [vmem:[%s948_s1] sm:$0xff]  ;;  %vm131_vm6 = vcmask 31744   ;;  %vm136_vm7 = vcmask 64512   ;;  %vm147_vm8 = vcmask 97280   ;;  %v325_v52 = vld [vmem:[#allocation5 + $0x78] sm:$0xff] }
  0x12   :  { %v722_v2 = vadd.s32 8, %v719_v1  ;;  %v44_v4 = vadd.s32 24, %v719_v1  ;;  %vm57_vm0 = vcmp.lt.s32.totalorder %v719_v1, 1  ;;  %vm82_vm2 = vcmp.lt.s32.totalorder %v719_v1, 7  ;;  %581 = vmatpush3.msk.msra.mxu0 %vm160_vm1, %v142_v16  ;;  %v324_v54 = vld [vmem:[#allocation5 + $0x70] sm:$0xff]  ;;  %v323_v55 = vld [vmem:[#allocation5 + $0x68] sm:$0xff] }
  0x13   :  { %v61_v20 = vsel %vm57_vm0, %v56_v8, %v53_v9  ;;  %v85_v22 = vsel %vm82_vm2, %v78_v10, %v79_v13  ;;  %v84_v23 = vsel %vm82_vm2, %v79_v13, %v80_v15  ;;  %105 = vrot.lane.b32.xlu0 %v36_v7, %s680_s30  ;;  %v58_v24 = vsel %vm57_vm0, %v55_v14, %v56_v8  ;;  %v322_v56 = vld [vmem:[#allocation5 + $0x60] sm:$0xff]  ;;  %v321_v57 = vld [vmem:[#allocation5 + $0x58] sm:$0xff]  ;;  %v320_v58 = vld [vmem:[#allocation5 + $0x50] sm:$0xff]  ;;  %s682_s12 = smov 64   ;;  %s684_s20 = smov [#allocation8]  }
  0x14   :  { %v46_v3 = vand.u32 15, %v722_v2  ;;  %v48_v19 = vand.u32 15, %v44_v4  ;;  %119 = vrot.lane.b32.xlu1 %v85_v22, %s679_s22  ;;  %v60_v25 = vsel %vm57_vm0, %v53_v9, %v54_v12  ;;  %582 = vmatprep.subr.mxu0 %v141_v21  ;;  %v59_v27 = vsel %vm57_vm0, %v54_v12, %v55_v14  ;;  %v319_v59 = vld [vmem:[#allocation5 + $0x48] sm:$0xff]  ;;  %v318_v60 = vld [vmem:[#allocation5 + $0x40] sm:$0xff]  ;;  %v317_v61 = vld [vmem:[#allocation5 + $0x38] sm:$0xff]  ;;  %s538_s21 = sshll.u32 %s684_s20, 4  ;;  %s539_s21 = int_to_ptr.vmem [resolvable:$true] %s538_s21 }
  0x15   :  { %v86_v28 = vsel %vm82_vm2, %v81_v17, %v78_v10  ;;  %583 = vmatpush3.msra.mxu0 %v141_v21  ;;  %v83_v29 = vsel %vm82_vm2, %v80_v15, %v81_v17  ;;  %v45_v31 = vand.u32 15, %v719_v1  ;;  %v43_v32 = vadd.s32 16, %v719_v1  ;;  %v316_v62 = vld [vmem:[#allocation5 + $0x30] sm:$0xff]  ;;  %v315_v63 = vld [vmem:[#allocation5 + $0x28] sm:$0xff]  ;;  %v314_v0 = vld [vmem:[#allocation5 + $0x20] sm:$0xff]  ;;  %p658_p6 = scmp.lt.s32.totalorder %s539_s21, %s539_s21 }
  0x16   :  { %vm745_vm3 = vcmp.eq.s32.totalorder %v46_v3, 15  ;;  %vm77_vm4 = vcmp.eq.s32.totalorder %v48_v19, 15  ;;  %v681_v53 = vmov 0.0   ;;  %v313_v3 = vld [vmem:[#allocation5 + $0x18] sm:$0xff]  ;;  %v312_v4 = vld [vmem:[#allocation5 + $0x10] sm:$0xff]  ;;  %v311_v5 = vld [vmem:[#allocation5 + $0x8] sm:$0xff] }
  0x17   :  { %v96_v26 = vsel %vm745_vm3, 0.0, %v84_v23  ;;  %107 = vrot.lane.b32.xlu0 %v37_v11, %s680_s30  ;;  %v98_v30 = vsel %vm77_vm4, 0.0, %v86_v28  ;;  %vm49_vm5 = vcmp.eq.s32.totalorder %v45_v31, 0  ;;  %v47_v36 = vand.u32 15, %v43_v32  ;;  %344 = vmatprep.subr.mxu1 %v681_v53  ;;  %v310_v6 = vld [vmem:[#allocation5] sm:$0xff]  ;;  %v333_v7 = vld [vmem:[#allocation5 + $0xb8] sm:$0xff] }
  0x18   :  { %121 = vrot.lane.b32.xlu1 %v96_v26, %s679_s22  ;;  %v70_v35 = vsel %vm49_vm5, 0.0, %v61_v20  ;;  %590 = vmatprep.subr.mxu0 %v681_v53  ;;  %v332_v8 = vld [vmem:[#allocation5 + $0xb0] sm:$0xff]  ;;  %v331_v9 = vld [vmem:[#allocation5 + $0xa8] sm:$0xff]  ;;  %v330_v10 = vld [vmem:[#allocation5 + $0xa0] sm:$0xff]  ;;  %vm265_vm10 = vcmask 523264   ;;  %vm683_vm15 = vmmov 0  }
  0x19   :  { %vm51_vm9 = vcmp.eq.s32.totalorder %v47_v36, 0  ;;  %345 = vmatpush1.msra.mxu1 %v325_v52  ;;  %v329_v11 = vld [vmem:[#allocation5 + $0x98] sm:$0xff]  ;;  %v328_v12 = vld [vmem:[#allocation5 + $0x90] sm:$0xff]  ;;  %v327_v13 = vld [vmem:[#allocation5 + $0x88] sm:$0xff] }
  0x1a   :  { %v72_v44 = vsel %vm51_vm9, 0.0, %v59_v27  ;;  %346 = vmatprep.subr.mxu1 %v681_v53  ;;  %v547_v14 = vld [vmem:[%s951_s4] ss:$0 sm:$0xff]  ;;  %v326_v32 = vld [vmem:[#allocation5 + $0x80] sm:$0xff] }
  0x1b   :  { %123 = vrot.lane.b32.xlu0 %v83_v29, %s679_s22  ;;  %347 = vmatpush1.msra.mxu1 %v324_v54 }
  0x1c   :  { %125 = vrot.lane.b32.xlu1 %v98_v30, %s679_s22  ;;  %348 = vmatprep.subr.mxu1 %v681_v53  ;;  %s653_s22 = scalar_lea.vmem %s539_s21, 32 }
  0x1d   :  { %349 = vmatpush1.msra.mxu1 %v323_v55  ;;  %p654_p5 = scmp.ne.s32.totalorder %s539_s21, %s653_s22  ;;  %p659_p7 = scmp.lt.s32.totalorder %s653_s22, %s653_s22 }
  0x1e   :  { %350 = vmatprep.subr.mxu1 %v681_v53 }
  0x1f   :  { %351 = vmatpush1.msra.mxu1 %v322_v56  ;;  %p660_p8 = por %p659_p7, %p658_p6 }
  0x20   :  { %352 = vmatprep.subr.mxu1 %v681_v53 }
  0x21   :  { %353 = vmatpush1.msra.mxu1 %v321_v57  ;;  %p661_p9 = pnand %p660_p8, %p654_p5 }
  0x22   :  { %354 = vmatprep.subr.mxu1 %v681_v53 }
  0x23   :  { %355 = vmatpush1.msra.mxu1 %v320_v58 }
  0x24   :  { %356 = vmatprep.subr.mxu1 %v681_v53 }
  0x25   :  { %357 = vmatpush1.msra.mxu1 %v319_v59 }
  0x26   :  { %358 = vmatprep.subr.mxu1 %v681_v53 }
  0x27   :  { %359 = vmatpush1.msra.mxu1 %v318_v60 }
  0x28   :  { %360 = vmatprep.subr.mxu1 %v681_v53 }
  0x29   :  { %361 = vmatpush1.msra.mxu1 %v317_v61 }
  0x2a   :  { %362 = vmatprep.subr.mxu1 %v681_v53 }
  0x2b   :  { %363 = vmatpush1.msra.mxu1 %v316_v62 }
  0x2c   :  { %364 = vmatprep.subr.mxu1 %v681_v53 }
  0x2d   :  { %365 = vmatpush1.msra.mxu1 %v315_v63 }
  0x2e   :  { %366 = vmatprep.subr.mxu1 %v681_v53 }
  0x2f   :  { %367 = vmatpush1.msra.mxu1 %v314_v0  ;;  %v454_v0 = vld [vmem:[%s950_s3 + $0x78] sm:$0xff] }
  0x30   :  { %368 = vmatprep.subr.mxu1 %v681_v53 }
  0x31   :  { %369 = vmatpush1.msra.mxu1 %v313_v3  ;;  %v453_v3 = vld [vmem:[%s950_s3 + $0x70] sm:$0xff] }
  0x32   :  { %370 = vmatprep.subr.mxu1 %v681_v53 }
  0x33   :  { %371 = vmatpush1.msra.mxu1 %v312_v4  ;;  %v452_v4 = vld [vmem:[%s950_s3 + $0x68] sm:$0xff] }
  0x34   :  { %372 = vmatprep.subr.mxu1 %v681_v53 }
  0x35   :  { %373 = vmatpush1.msra.mxu1 %v311_v5  ;;  %v451_v5 = vld [vmem:[%s950_s3 + $0x60] sm:$0xff] }
  0x36   :  { %374 = vmatprep.subr.mxu1 %v681_v53 }
  0x37   :  { %375 = vmatpush1.msra.mxu1 %v310_v6  ;;  %v450_v6 = vld [vmem:[%s950_s3 + $0x58] sm:$0xff] }
  0x38   :  { %392 = vmatprep.subr.mxu1 %v681_v53 }
  0x39   :  { %393 = vmatpush2.msra.mxu1 %v333_v7  ;;  %v449_v7 = vld [vmem:[%s950_s3 + $0x50] sm:$0xff] }
  0x3a   :  { %394 = vmatprep.subr.mxu1 %v681_v53 }
  0x3b   :  { %395 = vmatpush2.msra.mxu1 %v332_v8  ;;  %v448_v8 = vld [vmem:[%s950_s3 + $0x48] sm:$0xff] }
  0x3c   :  { %396 = vmatprep.subr.mxu1 %v681_v53 }
  0x3d   :  { %397 = vmatpush2.msra.mxu1 %v331_v9  ;;  %v447_v9 = vld [vmem:[%s950_s3 + $0x40] sm:$0xff] }
  0x3e   :  { %398 = vmatprep.subr.mxu1 %v681_v53 }
  0x3f   :  { %399 = vmatpush2.msra.mxu1 %v330_v10  ;;  %v446_v10 = vld [vmem:[%s950_s3 + $0x38] sm:$0xff] }
  0x40   :  { %400 = vmatprep.subr.mxu1 %v681_v53 }
  0x41   :  { %401 = vmatpush2.msra.mxu1 %v329_v11  ;;  %v445_v11 = vld [vmem:[%s950_s3 + $0x30] sm:$0xff] }
  0x42   :  { %402 = vmatprep.subr.mxu1 %v681_v53 }
  0x43   :  { %403 = vmatpush2.msra.mxu1 %v328_v12  ;;  %v444_v12 = vld [vmem:[%s950_s3 + $0x28] sm:$0xff] }
  0x44   :  { %404 = vmatprep.subr.mxu1 %v681_v53 }
  0x45   :  { %405 = vmatpush2.msra.mxu1 %v327_v13  ;;  %v443_v13 = vld [vmem:[%s950_s3 + $0x20] sm:$0xff] }
  0x46   :  { %406 = vmatprep.subr.mxu1 %v681_v53 }
  0x47   :  { %407 = vmatpush2.msra.mxu1 %v326_v32 }
  0x81   :  { %v110_v33 = vpop.permute.xlu1 %109  ;;  %v104_v34 = vpop.permute.xlu0 %103 }
  0x82   :  { %v132_v37 = vsel %vm131_vm6, %v70_v35, %v104_v34  ;;  %v135_v46 = vsel %vm131_vm6, %v58_v24, %v110_v33 }
  0x85   :  { %v106_v38 = vpop.permute.xlu0 %105 }
  0x86   :  { %v120_v39 = vpop.permute.xlu1 %119  ;;  %v133_v41 = vsel %vm131_vm6, %v60_v25, %v106_v38 }
  0x87   :  { %v137_v40 = vsel %vm136_vm7, %v132_v37, %v120_v39 }
  0x88   :  { %584 = vmatprep.mubr.msk.f32.mxu0 %vm147_vm8, %v137_v40  ;;  %v274_v40 = vand.u32 7, %v719_v1  ;;  %v556_v1 = vld [vmem:[%s951_s4 + $0x2] ss:$0 sm:$0xff] }
  0x89   :  { %v108_v42 = vpop.permute.xlu0 %107 }
  0x8a   :  { %v122_v43 = vpop.permute.xlu1 %121  ;;  %v134_v47 = vsel %vm131_vm6, %v72_v44, %v108_v42  ;;  %vm834_vm11 = vcmp.eq.s32.totalorder %v274_v40, 7  ;;  %vm838_vm12 = vcmp.eq.s32.totalorder %v274_v40, 0 }
  0x8b   :  { %v138_v45 = vsel %vm136_vm7, %v133_v41, %v122_v43  ;;  %v275_v41 = vand.u32 7, %v722_v2 }
  0x8c   :  { %585 = vmatmul.mubr.msk.f32.vlgmr.msra.gmra.mxu0 %vm147_vm8, %v138_v45 }
  0x8d   :  { %v124_v48 = vpop.permute.xlu0 %123  ;;  %vm842_vm13 = vcmp.eq.s32.totalorder %v275_v41, 7  ;;  %vm846_vm14 = vcmp.eq.s32.totalorder %v275_v41, 0  ;;  %591 = vmatpush3.msra.mxu0 %v454_v0 }
  0x8e   :  { %v126_v49 = vpop.permute.xlu1 %125  ;;  %v139_v50 = vsel %vm136_vm7, %v134_v47, %v124_v48  ;;  %592 = vmatprep.subr.mxu0 %v681_v53 }
  0x8f   :  { %v140_v51 = vsel %vm136_vm7, %v135_v46, %v126_v49  ;;  %587 = vmatprep.mubr.msk.f32.mxu0 %vm147_vm8, %v139_v50  ;;  %593 = vmatpush3.msra.mxu0 %v453_v3 }
  0x90   :  { %588 = vmatmul.mubr.msk.f32.gmra.mxu0 %vm147_vm8, %v140_v51  ;;  %594 = vmatprep.subr.mxu0 %v681_v53 }
  0x91   :  { %595 = vmatpush3.msra.mxu0 %v452_v4  ;;  %622 = vmatprep.mubr.msk.f32.mxu0 %vm683_vm15, %v681_v53 }
  0x92   :  { %596 = vmatprep.subr.mxu0 %v681_v53 }
  0x93   :  { %597 = vmatpush3.msra.mxu0 %v451_v5 }
  0x94   :  { %598 = vmatprep.subr.mxu0 %v681_v53 }
  0x95   :  { %599 = vmatpush3.msra.mxu0 %v450_v6 }
  0x96   :  { %600 = vmatprep.subr.mxu0 %v681_v53 }
  0x97   :  { %601 = vmatpush3.msra.mxu0 %v449_v7 }
  0x98   :  { %602 = vmatprep.subr.mxu0 %v681_v53 }
  0x99   :  { %603 = vmatpush3.msra.mxu0 %v448_v8 }
  0x9a   :  { %604 = vmatprep.subr.mxu0 %v681_v53 }
  0x9b   :  { %605 = vmatpush3.msra.mxu0 %v447_v9 }
  0x9c   :  { %606 = vmatprep.subr.mxu0 %v681_v53 }
  0x9d   :  { %607 = vmatpush3.msra.mxu0 %v446_v10 }
  0x9e   :  { %608 = vmatprep.subr.mxu0 %v681_v53 }
  0x9f   :  { %609 = vmatpush3.msra.mxu0 %v445_v11 }
  0xa0   :  { %610 = vmatprep.subr.mxu0 %v681_v53 }
  0xa1   :  { %611 = vmatpush3.msra.mxu0 %v444_v12 }
  0xa2   :  { %612 = vmatprep.subr.mxu0 %v681_v53 }
  0xa3   :  { %613 = vmatpush3.msra.mxu0 %v443_v13 }
  0xa4   :  { %614 = vmatprep.subr.mxu0 %v681_v53 }
 0x14c   :  { %v586_v15 = vpop.f32.mrf.mxu0 }
 0x14d   :  { %v236_v16 = vadd.f32 %v586_v15, %v547_v14  ;;  %v441_v15 = vld [vmem:[%s950_s3 + $0x10] sm:$0xff] }
 0x14e   :  { %v230_v17 = vpop.f32.mrf.mxu0 }
 0x14f   :  { %v250_v18 = vmax.f32 %v236_v16, 0.0  ;;  %v231_v19 = vadd.f32 %v547_v14, %v230_v17  ;;  %v440_v16 = vld [vmem:[%s950_s3 + $0x8] sm:$0xff]  ;;  %v439_v17 = vld [vmem:[%s950_s3] sm:$0xff] }
 0x150   :  { %v589_v21 = vpop.f32.mrf.mxu0 }
 0x151   :  { %v249_v20 = vmax.f32 %v231_v19, 0.0  ;;  %v246_v22 = vadd.f32 %v589_v21, %v547_v14  ;;  %v254_v23 = vrot.slane %v250_v18, 1 }
 0x152   :  { %v240_v25 = vpop.f32.mrf.mxu0 }
 0x153   :  { %v253_v24 = vrot.slane %v249_v20, 1  ;;  %v252_v26 = vmax.f32 %v246_v22, 0.0  ;;  %v241_v27 = vadd.f32 %v547_v14, %v240_v25  ;;  %v442_v14 = vld [vmem:[%s950_s3 + $0x18] sm:$0xff] }
 0x154   :  { %615 = vmatpush3.msra.mxu0 %v442_v14 }
 0x155   :  { %v259_v28 = vsel %vm82_vm2, %v253_v24, %v254_v23  ;;  %v256_v30 = vrot.slane %v252_v26, 1  ;;  %v251_v31 = vmax.f32 %v241_v27, 0.0  ;;  %616 = vmatprep.subr.mxu0 %v681_v53 }
 0x156   :  { %v261_v29 = vmax.f32 %v249_v20, %v259_v28  ;;  %617 = vmatpush3.msra.mxu0 %v441_v15 }
 0x157   :  { %v260_v33 = vsel %vm82_vm2, %v256_v30, %v253_v24  ;;  %v255_v34 = vrot.slane %v251_v31, 1  ;;  %618 = vmatprep.subr.mxu0 %v681_v53 }
 0x158   :  { %266 = vst.msk [vmem:[#allocation2] sm:$0xff] %vm265_vm10, %v261_v29  ;;  %v264_v35 = vmax.f32 %v252_v26, %v260_v33  ;;  %619 = vmatpush3.msra.mxu0 %v440_v16 }
 0x159   :  { %v257_v36 = vsel %vm82_vm2, %v255_v34, %v256_v30  ;;  %v258_v37 = vsel %vm82_vm2, %v254_v23, %v255_v34  ;;  %620 = vmatprep.subr.mxu0 %v681_v53 }
 0x15a   :  { %269 = vst.msk [vmem:[#allocation2 + $0x18] sm:$0xff] %vm265_vm10, %v264_v35  ;;  %v262_v38 = vmax.f32 %v250_v18, %v258_v37  ;;  %v263_v39 = vmax.f32 %v251_v31, %v257_v36  ;;  %621 = vmatpush3.msra.mxu0 %v439_v17  ;;  %v553_v18 = vld [vmem:[%s951_s4 + $0x1] ss:$0 sm:$0xff] }
 0x15c   :  { %267 = vst.msk [vmem:[#allocation2 + $0x8] sm:$0xff] %vm265_vm10, %v262_v38  ;;  %268 = vst.msk [vmem:[#allocation2 + $0x10] sm:$0xff] %vm265_vm10, %v263_v39 }
 0x163   :  { %v272_v44 = vld [vmem:[#allocation2 + $0x10] ss:$2 sm:$0xff]  ;;  %v270_v45 = vld [vmem:[#allocation2] ss:$2 sm:$0xff] }
 0x164   :  { %304 = vrot.lane.b32.xlu1 %v272_v44, %s682_s12  ;;  %v279_v2 = vrot.slane %v272_v44, 7  ;;  %v291_v48 = vrot.slane %v272_v44, 1  ;;  %302 = vrot.lane.b32.xlu0 %v270_v45, %s682_s12  ;;  %v278_v49 = vrot.slane %v270_v45, 7  ;;  %v290_v50 = vrot.slane %v270_v45, 1 }
 0x166   :  { %v292_v51 = vsel %vm82_vm2, %v290_v50, %v291_v48  ;;  %v281_v52 = vsel %vm57_vm0, %v279_v2, %v278_v49  ;;  %v293_v54 = vsel %vm82_vm2, %v291_v48, %v290_v50  ;;  %v280_v55 = vsel %vm57_vm0, %v278_v49, %v279_v2 }
 0x167   :  { %v298_v56 = vsel %vm834_vm11, 0.0, %v292_v51  ;;  %v286_v57 = vsel %vm838_vm12, 0.0, %v281_v52  ;;  %v299_v58 = vsel %vm842_vm13, 0.0, %v293_v54  ;;  %v287_v59 = vsel %vm846_vm14, 0.0, %v280_v55 }
 0x168   :  { %554 = vmatprep.mubr.msk.f32.mxu1 %vm265_vm10, %v298_v56  ;;  %vm530_vm0 = vcmask 74752  }
 0x1d6   :  { %v303_v60 = vpop.permute.xlu0 %302  ;;  %v305_v62 = vpop.permute.xlu1 %304 }
 0x1d7   :  { %v308_v61 = vsel %vm265_vm10, %v286_v57, %v303_v60  ;;  %v309_v63 = vsel %vm265_vm10, %v287_v59, %v305_v62 }
 0x1d8   :  { %409 = vmatmul.mubr.f32.vlgmr.msra.gmra.mxu1 %v308_v61 }
 0x1d9   :  { %555 = vmatprep.mubr.msk.f32.mxu1 %vm265_vm10, %v299_v58 }
 0x1dc   :  { %414 = vmatmul.mubr.f32.gmra.mxu1 %v309_v63 }
 0x298   :  { %v410_v19 = vpop.f32.mrf.mxu1 }
 0x299   :  { %v411_v20 = vadd.f32 %v553_v18, %v410_v19 }
 0x29a   :  { %v412_v21 = vpop.f32.mrf.mxu1 }
 0x29b   :  { %v419_v23 = vmax.f32 %v411_v20, 0.0 }
 0x29c   :  { %v415_v22 = vpop.f32.mrf.mxu1 }
 0x29d   :  { %v416_v24 = vadd.f32 %v553_v18, %v415_v22  ;;  %v421_v27 = vrot.slane %v419_v23, 1 }
 0x29e   :  { %v417_v25 = vpop.f32.mrf.mxu1 }
 0x29f   :  { %v420_v26 = vmax.f32 %v416_v24, 0.0 }
 0x2a1   :  { %v422_v28 = vrot.slane %v420_v26, 1 }
 0x2a3   :  { %v423_v29 = vsel %vm82_vm2, %v421_v27, %v422_v28  ;;  %v424_v53 = vsel %vm82_vm2, %v422_v28, %v421_v27 }
 0x2a4   :  { %v425_v30 = vmax.f32 %v419_v23, %v423_v29  ;;  %v426_v31 = vmax.f32 %v420_v26, %v424_v53 }
 0x2a6   :  { %427 = vst [vmem:[#allocation3] sm:$0xff] %v425_v30  ;;  %428 = vst [vmem:[#allocation3 + $0x8] sm:$0xff] %v426_v31 }
 0x2ad   :  { %v429_v32 = vld [vmem:[#allocation3] ss:$2 sm:$0xff] }
 0x2ae   :  { %v430_v33 = vrot.slane %v429_v32, 1  ;;  %v432_v35 = vrot.slane %v429_v32, 2  ;;  %v434_v37 = vrot.slane %v429_v32, 3 }
 0x2b0   :  { %v431_v34 = vadd.f32 %v430_v33, %v429_v32 }
 0x2b2   :  { %v433_v36 = vadd.f32 %v432_v35, %v431_v34 }
 0x2b4   :  { %v435_v38 = vadd.f32 %v434_v37, %v433_v36 }
 0x2b6   :  { %436 = vst [vmem:[#allocation4] sm:$0xff] %v435_v38 }
 0x2bd   :  { %v437_v39 = vld [vmem:[#allocation4] ss:$4 sm:$0x3] }
 0x2be   :  { %v438_v40 = vmul.f32 0.25, %v437_v39 }
 0x2c0   :  { %623 = vmatmul.mubr.f32.vlgmr.msra.gmra.mxu0 %v438_v40 }
 0x380   :  { %v526_v41 = vpop.f32.mrf.mxu0 }
 0x381   :  { %v527_v42 = vadd.f32 %v556_v1, %v526_v41 }
 0x382   :  { %v624_v43 = vpop.f32.mrf.mxu0 }
 0x383   :  { %531 = vst.msk [vmem:[#allocation8] sm:$0x3] %vm530_vm0, %v527_v42 }
 0x384   :  { %664 = shalt.err (!%p661_p9)
}
 0x385   :  { %541 = dma.vmem_to_hbm [thread:$0]  %s539_s21, 32, %s952_s5, [#allocation7]  }
 0x386   :  { %675 = dma.done.wait [#allocation7], 32  }
 0x387   :  { %676 = vsyncadd [#allocation7], 4294967264 }
 0x388   :  { %545 = vsyncpa [#allocation6], 1 }
 0x389   :  { %546 = vsyncpa [#allocation7], 1 }

</bundles_post_ra>
